<compile_context>
chip_gen: v6e
topology: v6e:2x2x1
jax: 0.10.0
libtpu: 0.0.40
codegen_flags: <defaults>
</compile_context>

<pallas_src>
import jax
import jax.numpy as jnp
from jax.experimental import pallas as pl
from jax.experimental.pallas import tpu as pltpu


def _round_up(v, m):
    return ((v + m - 1) // m) * m


def _matmul_bias_kernel(x_ref, w_ref, b_ref, o_ref, acc_ref):
    """K-tiled matmul: f32 VMEM accumulator, bias added on the final K step."""
    k = pl.program_id(2)

    @pl.when(k == 0)
    def _():
        acc_ref[...] = jnp.zeros_like(acc_ref)

    acc_ref[...] += jnp.dot(
        x_ref[...], w_ref[...], preferred_element_type=jnp.float32
    )

    @pl.when(k == pl.num_programs(2) - 1)
    def _():
        o_ref[...] = (
            acc_ref[...] + b_ref[...].astype(jnp.float32)
        ).astype(o_ref.dtype)


def _matmul_bias_kernel_single_k(x_ref, w_ref, b_ref, o_ref):
    """Reduction fits one tile: no scratch, no init/finalize round trip."""
    o_ref[...] = (
        jnp.dot(x_ref[...], w_ref[...], preferred_element_type=jnp.float32)
        + b_ref[...].astype(jnp.float32)
    ).astype(o_ref.dtype)


def shared_moe(x, weights, biases, *, tm=512, tn=512, tk=1024):
    """SharedMOE forward: sum_e (x @ W_e^T + b_e).

    x:       [tokens, H_in]        (float32)
    weights: [E, H_out, H_in]      (PyTorch nn.Linear layout)
    biases:  [E, H_out]
    returns  [tokens, H_out]
    """
    M, K = x.shape
    E, N, K_w = weights.shape
    assert K_w == K and biases.shape == (E, N)

    # NOTE: the collapse over experts is only valid because SharedMOE has no
    # router/gating — every expert contributes with weight 1.
    # Fused sum + transpose (+ bf16 cast) in one pass; bias stays f32.
    w = jnp.einsum("eoh->ho", weights).astype(jnp.bfloat16)         # [K, N]
    b = jnp.sum(biases, axis=0).reshape(1, N).astype(jnp.float32)   # [1, N]
    x_b = x.astype(jnp.bfloat16)

    # bf16 operands: sublane dims padded to multiples of 16, lane dims to 128.
    tm = min(tm, _round_up(M, 16))
    tn = min(tn, _round_up(N, 128))
    tk = min(tk, _round_up(K, 128))
    Mp, Np, Kp = _round_up(M, tm), _round_up(N, tn), _round_up(K, tk)

    x_p = x_b if (Mp == M and Kp == K) else jnp.pad(x_b, ((0, Mp - M), (0, Kp - K)))
    w_p = w if (Kp == K and Np == N) else jnp.pad(w, ((0, Kp - K), (0, Np - N)))
    b_p = b if Np == N else jnp.pad(b, ((0, 0), (0, Np - N)))

    k_tiles = Kp // tk
    single_k = k_tiles == 1
    kernel = _matmul_bias_kernel_single_k if single_k else _matmul_bias_kernel
    scratch = [] if single_k else [pltpu.VMEM((tm, tn), jnp.float32)]

    # VMEM budget: double-buffered bf16 x/W tiles + f32 out tiles + bias
    # (+ f32 acc when K-tiled), 2x headroom, capped well under v7x's 64 MiB.
    need = 2 * (tm * tk * 2 + tk * tn * 2 + tn * 4 + tm * tn * 4)
    if not single_k:
        need += tm * tn * 4
    vmem_limit = min(max(2 * need, 32 * 1024 * 1024), 48 * 1024 * 1024)

    out = pl.pallas_call(
        kernel,
        out_shape=jax.ShapeDtypeStruct((Mp, Np), x.dtype),
        grid_spec=pltpu.PrefetchScalarGridSpec(
            num_scalar_prefetch=0,
            grid=(Mp // tm, Np // tn, k_tiles),
            in_specs=[
                pl.BlockSpec((tm, tk), lambda i, j, k: (i, k)),   # x tile (bf16)
                pl.BlockSpec((tk, tn), lambda i, j, k: (k, j)),   # summed W tile (bf16)
                pl.BlockSpec((1, tn), lambda i, j, k: (0, j)),    # summed bias (f32)
            ],
            out_specs=pl.BlockSpec((tm, tn), lambda i, j, k: (i, j)),
            scratch_shapes=scratch,
        ),
        compiler_params=pltpu.CompilerParams(
            dimension_semantics=("parallel", "parallel", "arbitrary"),
            vmem_limit_bytes=vmem_limit,
        ),
    )(x_p, w_p, b_p)

    return out[:M, :N] if (Mp != M or Np != N) else out


if __name__ == "__main__":
    # MOEConfig(n_experts=4, top_k=2, hidden_size=32); bsz=2, seq_len=8
    n_experts = 4
    hidden = 32
    bsz, seq_len = 2, 8
    n_tokens = bsz * seq_len

    key = jax.random.PRNGKey(0)
    kx, kw, kb = jax.random.split(key, 3)

    x = jax.random.normal(kx, (n_tokens, hidden), dtype=jnp.float32)
    # PyTorch nn.Linear layout: [E, out_features, in_features].
    weights = jax.random.normal(kw, (n_experts, hidden, hidden), dtype=jnp.float32) * 0.1
    biases = jax.random.normal(kb, (n_experts, hidden), dtype=jnp.float32) * 0.1

    # jit so weight prep (einsum/cast/pad) fuses with operand staging; in a real
    # model the pre-summed bf16 weight would be computed once and reused.
    fn = jax.jit(shared_moe, static_argnames=("tm", "tn", "tk"))
    out = jax.block_until_ready(fn(x, weights, biases))

    # Pure-JAX reference matching the PyTorch module exactly:
    # per-expert x @ W_e^T + b_e, stacked over experts, summed.
    ref = jnp.sum(
        jnp.einsum("nh,eoh->neo", x, weights) + biases[None, :, :],
        axis=1,
    )
    assert out.shape == ref.shape
    # Tolerance loosened vs f32 because MXU operands are bf16 (f32 accumulate).
    assert jnp.allclose(out, ref, atol=3e-2, rtol=3e-2), "mismatch vs reference"

    print("KERNEL_OK")
</pallas_src>

<mosaic_0001>
module attributes {stable_mosaic.version = 11 : i64} {
  func.func @_matmul_bias_kernel_single_k(%arg0: i32, %arg1: i32, %arg2: i32, %arg3: memref<16x128xbf16, #tpu.memory_space<vmem>>, %arg4: memref<128x128xbf16, #tpu.memory_space<vmem>>, %arg5: memref<1x128xf32, #tpu.memory_space<vmem>>, %arg6: memref<16x128xf32, #tpu.memory_space<vmem>>) attributes {dimension_semantics = [#tpu.dimension_semantics<parallel>, #tpu.dimension_semantics<parallel>, #tpu.dimension_semantics<arbitrary>], iteration_bounds = array<i64: 1, 1, 1>, scalar_prefetch = 0 : i64, scratch_operands = 0 : i64, tpu.core_type = #tpu.core_type<tc>, window_params = [{transform_indices = @transform_0, window_bounds = array<i64: 16, 128>}, {transform_indices = @transform_1, window_bounds = array<i64: 128, 128>}, {transform_indices = @transform_2, window_bounds = array<i64: 1, 128>}, {transform_indices = @transform_3, window_bounds = array<i64: 16, 128>}]} {
    %c0 = arith.constant 0 : index
    %c0_0 = arith.constant 0 : index
    %0 = vector.load %arg3[%c0, %c0_0] : memref<16x128xbf16, #tpu.memory_space<vmem>>, vector<16x128xbf16>
    %c0_1 = arith.constant 0 : index
    %c0_2 = arith.constant 0 : index
    %1 = vector.load %arg4[%c0_1, %c0_2] : memref<128x128xbf16, #tpu.memory_space<vmem>>, vector<128x128xbf16>
    %cst = arith.constant dense<0.000000e+00> : vector<16x128xf32>
    %2 = tpu.matmul %0, %1, %cst {dimension_numbers = #tpu.dot_dimension_numbers<[1], [0], [0], [1], [0, 0, 1, 1], [], []>} : vector<16x128xbf16>, vector<128x128xbf16>, vector<16x128xf32> -> vector<16x128xf32>
    %c0_3 = arith.constant 0 : index
    %c0_4 = arith.constant 0 : index
    %3 = vector.load %arg5[%c0_3, %c0_4] : memref<1x128xf32, #tpu.memory_space<vmem>>, vector<1x128xf32>
    %4 = vector.broadcast %3 : vector<1x128xf32> to vector<16x128xf32>
    %5 = arith.addf %2, %4 : vector<16x128xf32>
    %c0_5 = arith.constant 0 : index
    %c0_6 = arith.constant 0 : index
    %6 = vector.load %arg6[%c0_5, %c0_6] : memref<16x128xf32, #tpu.memory_space<vmem>>, vector<16x128xf32>
    tpu.vector_store %arg6[%c0_5, %c0_6], %5 {strides = array<i32>} : memref<16x128xf32, #tpu.memory_space<vmem>>, vector<16x128xf32>,
    return
  }
  func.func @transform_0(%arg0: i32, %arg1: i32, %arg2: i32) -> (i32, i32) {
    %c0_i32 = arith.constant 0 : i32
    return %arg0, %arg2 : i32, i32
  }
  func.func @transform_1(%arg0: i32, %arg1: i32, %arg2: i32) -> (i32, i32) {
    %c0_i32 = arith.constant 0 : i32
    return %arg2, %arg1 : i32, i32
  }
  func.func @transform_2(%arg0: i32, %arg1: i32, %arg2: i32) -> (i32, i32) {
    %c0_i32 = arith.constant 0 : i32
    %c0_i32_0 = arith.constant 0 : i32
    return %c0_i32, %arg1 : i32, i32
  }
  func.func @transform_3(%arg0: i32, %arg1: i32, %arg2: i32) -> (i32, i32) {
    %c0_i32 = arith.constant 0 : i32
    return %arg0, %arg1 : i32, i32
  }
}

</mosaic_0001>

<bundles_post_ra>
// kernel: shared_moe.1
= control target key start
LH: loop header
LB: loop body
LE: loop exit
PB: predicated region body
PF: predicated region fallthrough
CT: control target
= control target key end

     0   :  { %v229_v1 = vmov 0.0   ;;  %vm230_vm0 = vmmov 0   ;;  %s287_s0 = inlined_call_operand.vmem [shape: bf16[16,128], index: 0, kind: input, shape index: {}]   ;;  %s288_s1 = inlined_call_operand.vmem [shape: bf16[128,128], index: 1, kind: input, shape index: {}]   ;;  %s289_s2 = inlined_call_operand.vmem [shape: f32[1,128], index: 2, kind: input, shape index: {}]   ;;  %s290_s3 = inlined_call_operand.hbm [shape: f32[16,128], index: 3, kind: output, shape index: {}]  }
   0x1   :  { %v198_v0 = vld [vmem:[%s288_s1 + $0x38] sm:$0xff]   ;;  %173 = vmatprep.subr.bf16.mxu0 %v229_v1  ;;  %v199_v2 = vld [vmem:[%s288_s1 + $0x30] sm:$0xff]   ;;  %189 = vmatprep.mubr.msk.bf16.mxu0 %vm230_vm0, %v229_v1  ;;  %v200_v3 = vld [vmem:[%s288_s1 + $0x28] sm:$0xff]  }
   0x2   :  { %174 = vmatpush3.bf16.msra.mxu0 %v198_v0 }
   0x3   :  { %175 = vmatprep.subr.bf16.mxu0 %v229_v1 }
   0x6   :  { %176 = vmatpush3.bf16.msra.mxu0 %v199_v2 }
   0x7   :  { %177 = vmatprep.subr.bf16.mxu0 %v229_v1 }
   0x8   :  { %8 = vsyncpa [#allocation3], 0  ;;  %v201_v4 = vld [vmem:[%s288_s1 + $0x20] sm:$0xff]   ;;  %v202_v5 = vld [vmem:[%s288_s1 + $0x18] sm:$0xff]   ;;  %s231_s5 = smov [#allocation2]  }
   0x9   :  { %v203_v6 = vld [vmem:[%s288_s1 + $0x10] sm:$0xff]   ;;  %v204_v7 = vld [vmem:[%s288_s1 + $0x8] sm:$0xff]   ;;  %v205_v8 = vld [vmem:[%s288_s1] sm:$0xff]   ;;  %s143_s6 = sshll.u32 %s231_s5, 4  ;;  %s144_s6 = int_to_ptr.vmem [resolvable:$true] %s143_s6 }
   0xa   :  { %178 = vmatpush3.bf16.msra.mxu0 %v200_v3  ;;  %v206_v9 = vld [vmem:[%s287_s0] sm:$0xff]   ;;  %s207_s1 = scalar_lea.vmem %s144_s6, 256  ;;  %p212_p1 = scmp.lt.s32.totalorder %s144_s6, %s144_s6 }
   0xb   :  { %179 = vmatprep.subr.bf16.mxu0 %v229_v1  ;;  %v154_v10 = vld [vmem:[%s289_s2] ss:$0 sm:$0xff]  ;;  %p208_p0 = scmp.ne.s32.totalorder %s144_s6, %s207_s1  ;;  %p213_p2 = scmp.lt.s32.totalorder %s207_s1, %s207_s1 }
   0xd   :  { %p214_p3 = por %p213_p2, %p212_p1 }
   0xe   :  { %180 = vmatpush3.bf16.msra.mxu0 %v201_v4 }
   0xf   :  { %181 = vmatprep.subr.bf16.mxu0 %v229_v1  ;;  %p215_p4 = pnand %p214_p3, %p208_p0 }
  0x12   :  { %182 = vmatpush3.bf16.msra.mxu0 %v202_v5 }
  0x13   :  { %183 = vmatprep.subr.bf16.mxu0 %v229_v1 }
  0x16   :  { %184 = vmatpush3.bf16.msra.mxu0 %v203_v6 }
  0x17   :  { %185 = vmatprep.subr.bf16.mxu0 %v229_v1 }
  0x1a   :  { %186 = vmatpush3.bf16.msra.mxu0 %v204_v7 }
  0x1b   :  { %187 = vmatprep.subr.bf16.mxu0 %v229_v1 }
  0x1e   :  { %188 = vmatpush3.bf16.msra.mxu0 %v205_v8 }
  0x21   :  { %190 = vmatmul.mubr.bf16.vlgmr.msra.gmra.mxu0 %v206_v9 }
  0xe1   :  { %v129_v11 = vpop.f32.mrf.mxu0 }
  0xe2   :  { %v130_v12 = vadd.f32 %v154_v10, %v129_v11 }
  0xe3   :  { %v191_v13 = vpop.f32.mrf.mxu0 }
  0xe4   :  { %136 = vst [vmem:[#allocation2] sm:$0xff] %v130_v12 }
  0xe5   :  { %v132_v14 = vpop.f32.mrf.mxu0 }
  0xe6   :  { %v133_v15 = vadd.f32 %v154_v10, %v132_v14 }
  0xe7   :  { %v192_v16 = vpop.f32.mrf.mxu0 }
  0xe8   :  { %137 = vst [vmem:[#allocation2 + $0x8] sm:$0xff] %v133_v15 }
  0xe9   :  { %218 = shalt.err (!%p215_p4)
}
  0xea   :  { %s232_s0 = smov 128   ;;  %s233_s2 = smov 8  }
  0xeb   :  { %149 = dma.vmem_to_hbm [thread:$0]  %s144_s6, 256, %s290_s3, [#allocation3], %s232_s0, %s232_s0, %s233_s2  }
  0xec   :  { %227 = dma.done.wait [#allocation3], 256  }
  0xed   :  { %228 = vsyncadd [#allocation3], 4294967040 }
  0xee   :  { %153 = vsyncpa [#allocation3], 1 }

</bundles_post_ra>
